<compile_context>
chip_gen: v7x
topology: tpu7x:2x2x1
jax: 0.10.0
libtpu: 0.0.40
codegen_flags: <defaults>
</compile_context>

<pallas_src>
import functools

import jax
import jax.numpy as jnp
from jax.experimental import pallas as pl
from jax.experimental.pallas import tpu as pltpu


def _round_up(x, m):
    return (x + m - 1) // m * m


def _coord_embed_kernel(idx_ref, table_ref, out_ref, hot_ref, *, segments):
    """One row tile: segment-local multi-hot build + one MXU dot.

    idx_ref:   (tp, C)    int32  -- per row, one segment-LOCAL column index per
                                    segment (-1 == "no hit in this segment")
    table_ref: (K, Mout)          -- fused gather+projection(+token) table
    out_ref:   (tp, Mout)
    hot_ref:   (tp, K)            -- VMEM scratch for the multi-hot matrix
    segments:  static tuple of (col, start, width); disjoint, 128-aligned,
               and tiling [0, K) exactly.
    """
    tp = idx_ref.shape[0]
    idx = idx_ref[...]
    # Segment-local one-hot: each index column only ever lands inside its own
    # 128-aligned slice of K, so build (tp, width) compares and store them
    # directly -- no full-width iota, no logical_or chain, no zero-fill.
    for col, start, width in segments:
        local_iota = jax.lax.broadcasted_iota(jnp.int32, (tp, width), 1)
        hit = local_iota == idx[:, col:col + 1]
        hot_ref[:, start:start + width] = hit.astype(hot_ref.dtype)

    # Single fused MXU dot: gather + per-axis concat + linear projection +
    # token-embedding broadcast + final cat, all at once.  MXU has huge slack
    # here; the kernel is bound by the (now minimal) one-hot build and stores.
    out_ref[...] = jnp.dot(
        hot_ref[...], table_ref[...], preferred_element_type=jnp.float32
    ).astype(out_ref.dtype)


def build_fused_table(token_table, value_table, w_linear, *, num_axes,
                      seg_w, tok_w, pack, dtype):
    """Fused gather+projection(+token) table (tiny XLA precompute).

    Callers with static weights should hoist/cache this (it only depends on
    the module parameters, not on `coord`)."""
    ntoken, e = value_table.shape
    m = token_table.shape[1]
    # torch Linear computes x @ W.T; W.T reshaped per-axis is (A, E, M).
    w_t = jnp.transpose(w_linear).reshape(num_axes, e, m)
    fused = jnp.einsum("ve,aem->avm", value_table, w_t,
                       precision=jax.lax.Precision.HIGHEST)      # (A, ntoken, M)
    k0 = num_axes * seg_w + tok_w
    table = jnp.zeros((k0, m), jnp.float32)
    for ax in range(num_axes):
        table = table.at[ax * seg_w: ax * seg_w + ntoken].set(fused[ax])
    table = table.at[num_axes * seg_w: num_axes * seg_w + 3].set(token_table)
    if pack == 1:
        return table.astype(dtype)
    # Block-diagonal copies so `pack` logical rows share one 128-lane out row.
    table_p = jnp.zeros((pack * k0, pack * m), jnp.float32)
    for p in range(pack):
        table_p = table_p.at[p * k0:(p + 1) * k0, p * m:(p + 1) * m].set(table)
    return table_p.astype(dtype)


def coordinate_embedding(coord, token_table, value_table, w_linear, *,
                         tile_rows=2048, compute_dtype=jnp.bfloat16,
                         out_dtype=jnp.float32, min_rows_for_kernel=1024):
    """Forward of CoordinateEmbedding.

    coord:       (N, S, A) integer coordinate tokens (values in [0, ntoken))
    token_table: (3, M)        == embedding_token.weight
    value_table: (ntoken, E)   == embedding_value.weight
    w_linear:    (M, A*E)      == linear_proj.weight (torch: out x in)
    returns      (N, 3 + S, M)
    """
    n, s, a = coord.shape
    ntoken, e = value_table.shape
    m = token_table.shape[1]
    assert w_linear.shape == (m, a * e)

    rows = n * (3 + s)

    # ---- small-input fallback: the pallas launch only pays off once rows are
    # in the thousands ---------------------------------------------------------
    if rows < min_rows_for_kernel:
        gathered = value_table[coord]                                # (N, S, A, E)
        proj = jnp.einsum("nsk,mk->nsm", gathered.reshape(n, s, a * e), w_linear,
                          precision=jax.lax.Precision.HIGHEST)
        tok = jnp.broadcast_to(token_table[None], (n, 3, m))
        return jnp.concatenate([tok, proj], axis=1).astype(out_dtype)

    # ---- lane-dense packing: fold `pack` logical rows into one >=128-lane row
    if m % 128 == 0:
        pack = 1
    elif (2 * m) % 128 == 0 and rows % 2 == 0:
        pack = 2
    else:
        pack = 1                                     # fall back to masked stores

    # 128-aligned, disjoint one-hot segments per packed group:
    #   A value segments of width seg_w + one token segment of width tok_w.
    seg_w = _round_up(ntoken, 128)
    tok_w = 128
    k0 = a * seg_w + tok_w                 # per-group K, multiple of 128
    kdim = pack * k0
    m_out = pack * m
    p_rows = rows // pack
    cols = pack * (a + 1)

    local = [(c, c * seg_w, seg_w) for c in range(a)] + [(a, a * seg_w, tok_w)]
    segments = tuple((p * (a + 1) + c, p * k0 + s0, w)
                     for p in range(pack) for (c, s0, w) in local)

    # ---- fused table (hoistable/cacheable when weights are static) -----------
    table_p = build_fused_table(token_table, value_table, w_linear,
                                num_axes=a, seg_w=seg_w, tok_w=tok_w,
                                pack=pack, dtype=compute_dtype)

    # ---- per-row segment-local indices (cheap int32 prep) --------------------
    coord_idx = coord.astype(jnp.int32)                               # (N, S, A)
    neg = jnp.full((n, s, 1), -1, jnp.int32)
    coord_rows = jnp.concatenate([coord_idx, neg], axis=-1)           # (N, S, A+1)
    tok_rows = jnp.full((n, 3, a + 1), -1, jnp.int32)
    tok_rows = tok_rows.at[:, :, a].set(jnp.arange(3, dtype=jnp.int32)[None, :])
    idx = jnp.concatenate([tok_rows, coord_rows], axis=1).reshape(rows, a + 1)
    idx_p = idx.reshape(p_rows, cols)

    # ---- row tile: as large as VMEM comfortably allows, multiple of 8,
    # and >=2 grid steps on big inputs so the "parallel" row axis shards
    # across both v7x TensorCores ----------------------------------------------
    bpe = jnp.dtype(compute_dtype).itemsize
    vmem_cap = max(8, (8 * 1024 * 1024 // (kdim * bpe)) // 8 * 8)  # hot <= 8 MiB
    if p_rows <= 16:
        tp = p_rows                     # single block == full array dims (legal)
        grid_rows = p_rows
    else:
        tile = max(8, (min(tile_rows, vmem_cap) // 8) * 8)
        half = _round_up(pl.cdiv(p_rows, 2), 8)
        tp = min(tile, half)
        grid_rows = _round_up(p_rows, tp)

    if grid_rows != p_rows:             # pad with "-1" rows -> all-zero outputs
        pad = grid_rows - p_rows
        idx_p = jnp.concatenate(
            [idx_p, jnp.full((pad, cols), -1, jnp.int32)], axis=0)
    grid = (grid_rows // tp,)

    kernel = functools.partial(_coord_embed_kernel, segments=segments)
    out = pl.pallas_call(
        kernel,
        out_shape=jax.ShapeDtypeStruct((grid_rows, m_out), out_dtype),
        grid=grid,
        in_specs=[
            pl.BlockSpec((tp, cols), lambda i: (i, 0)),
            # Resident fused table: constant index_map -> fetched once.
            # TODO(synk): pipeline_mode=pl.Buffered(1) would drop the redundant
            # second table buffer for very large ntoken*M configs (v7x 64 MiB).
            pl.BlockSpec((kdim, m_out), lambda i: (0, 0)),
        ],
        out_specs=pl.BlockSpec((tp, m_out), lambda i: (i, 0)),
        scratch_shapes=[pltpu.VMEM((tp, kdim), compute_dtype)],
        compiler_params=pltpu.CompilerParams(
            dimension_semantics=("parallel",),
            vmem_limit_bytes=32 * 1024 * 1024,
        ),
    )(idx_p, table_p)

    # Drop pad rows; unpacking the lane-dense rows is a free contiguous reshape.
    return out[:p_rows].reshape(n, 3 + s, m)


if __name__ == "__main__":
    # Module hyper-parameters (matching the torch __init__).
    num_axes, num_bits, num_embed, num_model = 3, 5, 32, 64
    dependent_embed = False
    ntoken = 2 ** num_bits if dependent_embed else 2 ** num_bits * num_axes

    key = jax.random.PRNGKey(0)
    k1, k2, k3, k4, k5 = jax.random.split(key, 5)
    token_table = jax.random.normal(k1, (3, num_model), jnp.float32)
    value_table = jax.random.normal(k2, (ntoken, num_embed), jnp.float32)
    w_linear = 0.05 * jax.random.normal(
        k3, (num_model, num_axes * num_embed), jnp.float32)

    def reference(coord):
        n_, s_, _ = coord.shape
        gathered = value_table[coord]                         # (N, S, A, E)
        proj = jnp.einsum("nsk,mk->nsm", gathered.reshape(n_, s_, -1), w_linear,
                          precision=jax.lax.Precision.HIGHEST)
        tok = jnp.broadcast_to(token_table[None], (n_, 3, num_model))
        return jnp.concatenate([tok, proj], axis=1)

    # 1) Small module-consistent shape; force the Pallas path (single tile).
    N, S = 2, 8
    coord = jax.random.randint(k4, (N, S, num_axes), 0, ntoken, jnp.int32)
    fwd_small = jax.jit(lambda c: coordinate_embedding(
        c, token_table, value_table, w_linear, min_rows_for_kernel=0))
    out = jax.block_until_ready(fwd_small(coord))
    ref = reference(coord)
    assert out.shape == (N, 3 + S, num_model), out.shape
    assert out.dtype == jnp.float32
    err = float(jnp.max(jnp.abs(out - ref)))
    assert jnp.allclose(out, ref, atol=3e-2, rtol=3e-2), err

    # 2) Larger shape: multi-step "parallel" grid + row-padding path.
    N2, S2 = 4, 510
    coord2 = jax.random.randint(k5, (N2, S2, num_axes), 0, ntoken, jnp.int32)
    fwd_big = jax.jit(lambda c: coordinate_embedding(
        c, token_table, value_table, w_linear))
    out2 = jax.block_until_ready(fwd_big(coord2))
    ref2 = reference(coord2)
    assert out2.shape == (N2, 3 + S2, num_model), out2.shape
    err2 = float(jnp.max(jnp.abs(out2 - ref2)))
    assert jnp.allclose(out2, ref2, atol=3e-2, rtol=3e-2), err2

    print("KERNEL_OK")
</pallas_src>

<mosaic_0001>
module attributes {stable_mosaic.version = 11 : i64} {
  func.func @_coord_embed_kernel(%arg0: i32, %arg1: memref<11x8xi32, #tpu.memory_space<vmem>>, %arg2: memref<1024x128xbf16, #tpu.memory_space<vmem>>, %arg3: memref<11x128xf32, #tpu.memory_space<vmem>>, %arg4: memref<11x1024xbf16, #tpu.memory_space<vmem>>) attributes {dimension_semantics = [#tpu.dimension_semantics<parallel>], iteration_bounds = array<i64: 1>, scalar_prefetch = 0 : i64, scratch_operands = 1 : i64, tpu.core_type = #tpu.core_type<tc>, window_params = [{transform_indices = @transform_0, window_bounds = array<i64: 11, 8>}, {pipeline_mode = #tpu.pipeline_mode<synchronous>, transform_indices = @transform_1, window_bounds = array<i64: 1024, 128>}, {transform_indices = @transform_2, window_bounds = array<i64: 11, 128>}]} {
    %c0 = arith.constant 0 : index
    %c0_0 = arith.constant 0 : index
    %0 = vector.load %arg1[%c0, %c0_0] : memref<11x8xi32, #tpu.memory_space<vmem>>, vector<11x8xi32>
    %1 = tpu.iota {dimensions = array<i32: 1>} : vector<11x128xi32>
    %2 = vector.extract_strided_slice %0 {offsets = [0, 0], sizes = [11, 1], strides = [1, 1]} : vector<11x8xi32> to vector<11x1xi32>
    %3 = vector.broadcast %2 : vector<11x1xi32> to vector<11x128xi32>
    %4 = arith.cmpi eq, %1, %3 : vector<11x128xi32>
    %5 = arith.extui %4 : vector<11x128xi1> to vector<11x128xi32>
    %6 = arith.sitofp %5 : vector<11x128xi32> to vector<11x128xf32>
    %7 = arith.truncf %6 : vector<11x128xf32> to vector<11x128xbf16>
    %c0_1 = arith.constant 0 : index
    %c0_2 = arith.constant 0 : index
    %8 = vector.load %arg4[%c0_1, %c0_2] : memref<11x1024xbf16, #tpu.memory_space<vmem>>, vector<11x128xbf16>
    tpu.vector_store %arg4[%c0_1, %c0_2], %7 {strides = array<i32>} : memref<11x1024xbf16, #tpu.memory_space<vmem>>, vector<11x128xbf16>,
    %9 = tpu.iota {dimensions = array<i32: 1>} : vector<11x128xi32>
    %10 = vector.extract_strided_slice %0 {offsets = [0, 1], sizes = [11, 1], strides = [1, 1]} : vector<11x8xi32> to vector<11x1xi32>
    %11 = vector.broadcast %10 : vector<11x1xi32> to vector<11x128xi32>
    %12 = arith.cmpi eq, %9, %11 : vector<11x128xi32>
    %13 = arith.extui %12 : vector<11x128xi1> to vector<11x128xi32>
    %14 = arith.sitofp %13 : vector<11x128xi32> to vector<11x128xf32>
    %15 = arith.truncf %14 : vector<11x128xf32> to vector<11x128xbf16>
    %c0_3 = arith.constant 0 : index
    %c128 = arith.constant 128 : index
    %16 = vector.load %arg4[%c0_3, %c128] : memref<11x1024xbf16, #tpu.memory_space<vmem>>, vector<11x128xbf16>
    tpu.vector_store %arg4[%c0_3, %c128], %15 {strides = array<i32>} : memref<11x1024xbf16, #tpu.memory_space<vmem>>, vector<11x128xbf16>,
    %17 = tpu.iota {dimensions = array<i32: 1>} : vector<11x128xi32>
    %18 = vector.extract_strided_slice %0 {offsets = [0, 2], sizes = [11, 1], strides = [1, 1]} : vector<11x8xi32> to vector<11x1xi32>
    %19 = vector.broadcast %18 : vector<11x1xi32> to vector<11x128xi32>
    %20 = arith.cmpi eq, %17, %19 : vector<11x128xi32>
    %21 = arith.extui %20 : vector<11x128xi1> to vector<11x128xi32>
    %22 = arith.sitofp %21 : vector<11x128xi32> to vector<11x128xf32>
    %23 = arith.truncf %22 : vector<11x128xf32> to vector<11x128xbf16>
    %c0_4 = arith.constant 0 : index
    %c256 = arith.constant 256 : index
    %24 = vector.load %arg4[%c0_4, %c256] : memref<11x1024xbf16, #tpu.memory_space<vmem>>, vector<11x128xbf16>
    tpu.vector_store %arg4[%c0_4, %c256], %23 {strides = array<i32>} : memref<11x1024xbf16, #tpu.memory_space<vmem>>, vector<11x128xbf16>,
    %25 = tpu.iota {dimensions = array<i32: 1>} : vector<11x128xi32>
    %26 = vector.extract_strided_slice %0 {offsets = [0, 3], sizes = [11, 1], strides = [1, 1]} : vector<11x8xi32> to vector<11x1xi32>
    %27 = vector.broadcast %26 : vector<11x1xi32> to vector<11x128xi32>
    %28 = arith.cmpi eq, %25, %27 : vector<11x128xi32>
    %29 = arith.extui %28 : vector<11x128xi1> to vector<11x128xi32>
    %30 = arith.sitofp %29 : vector<11x128xi32> to vector<11x128xf32>
    %31 = arith.truncf %30 : vector<11x128xf32> to vector<11x128xbf16>
    %c0_5 = arith.constant 0 : index
    %c384 = arith.constant 384 : index
    %32 = vector.load %arg4[%c0_5, %c384] : memref<11x1024xbf16, #tpu.memory_space<vmem>>, vector<11x128xbf16>
    tpu.vector_store %arg4[%c0_5, %c384], %31 {strides = array<i32>} : memref<11x1024xbf16, #tpu.memory_space<vmem>>, vector<11x128xbf16>,
    %33 = tpu.iota {dimensions = array<i32: 1>} : vector<11x128xi32>
    %34 = vector.extract_strided_slice %0 {offsets = [0, 4], sizes = [11, 1], strides = [1, 1]} : vector<11x8xi32> to vector<11x1xi32>
    %35 = vector.broadcast %34 : vector<11x1xi32> to vector<11x128xi32>
    %36 = arith.cmpi eq, %33, %35 : vector<11x128xi32>
    %37 = arith.extui %36 : vector<11x128xi1> to vector<11x128xi32>
    %38 = arith.sitofp %37 : vector<11x128xi32> to vector<11x128xf32>
    %39 = arith.truncf %38 : vector<11x128xf32> to vector<11x128xbf16>
    %c0_6 = arith.constant 0 : index
    %c512 = arith.constant 512 : index
    %40 = vector.load %arg4[%c0_6, %c512] : memref<11x1024xbf16, #tpu.memory_space<vmem>>, vector<11x128xbf16>
    tpu.vector_store %arg4[%c0_6, %c512], %39 {strides = array<i32>} : memref<11x1024xbf16, #tpu.memory_space<vmem>>, vector<11x128xbf16>,
    %41 = tpu.iota {dimensions = array<i32: 1>} : vector<11x128xi32>
    %42 = vector.extract_strided_slice %0 {offsets = [0, 5], sizes = [11, 1], strides = [1, 1]} : vector<11x8xi32> to vector<11x1xi32>
    %43 = vector.broadcast %42 : vector<11x1xi32> to vector<11x128xi32>
    %44 = arith.cmpi eq, %41, %43 : vector<11x128xi32>
    %45 = arith.extui %44 : vector<11x128xi1> to vector<11x128xi32>
    %46 = arith.sitofp %45 : vector<11x128xi32> to vector<11x128xf32>
    %47 = arith.truncf %46 : vector<11x128xf32> to vector<11x128xbf16>
    %c0_7 = arith.constant 0 : index
    %c640 = arith.constant 640 : index
    %48 = vector.load %arg4[%c0_7, %c640] : memref<11x1024xbf16, #tpu.memory_space<vmem>>, vector<11x128xbf16>
    tpu.vector_store %arg4[%c0_7, %c640], %47 {strides = array<i32>} : memref<11x1024xbf16, #tpu.memory_space<vmem>>, vector<11x128xbf16>,
    %49 = tpu.iota {dimensions = array<i32: 1>} : vector<11x128xi32>
    %50 = vector.extract_strided_slice %0 {offsets = [0, 6], sizes = [11, 1], strides = [1, 1]} : vector<11x8xi32> to vector<11x1xi32>
    %51 = vector.broadcast %50 : vector<11x1xi32> to vector<11x128xi32>
    %52 = arith.cmpi eq, %49, %51 : vector<11x128xi32>
    %53 = arith.extui %52 : vector<11x128xi1> to vector<11x128xi32>
    %54 = arith.sitofp %53 : vector<11x128xi32> to vector<11x128xf32>
    %55 = arith.truncf %54 : vector<11x128xf32> to vector<11x128xbf16>
    %c0_8 = arith.constant 0 : index
    %c768 = arith.constant 768 : index
    %56 = vector.load %arg4[%c0_8, %c768] : memref<11x1024xbf16, #tpu.memory_space<vmem>>, vector<11x128xbf16>
    tpu.vector_store %arg4[%c0_8, %c768], %55 {strides = array<i32>} : memref<11x1024xbf16, #tpu.memory_space<vmem>>, vector<11x128xbf16>,
    %57 = tpu.iota {dimensions = array<i32: 1>} : vector<11x128xi32>
    %58 = vector.extract_strided_slice %0 {offsets = [0, 7], sizes = [11, 1], strides = [1, 1]} : vector<11x8xi32> to vector<11x1xi32>
    %59 = vector.broadcast %58 : vector<11x1xi32> to vector<11x128xi32>
    %60 = arith.cmpi eq, %57, %59 : vector<11x128xi32>
    %61 = arith.extui %60 : vector<11x128xi1> to vector<11x128xi32>
    %62 = arith.sitofp %61 : vector<11x128xi32> to vector<11x128xf32>
    %63 = arith.truncf %62 : vector<11x128xf32> to vector<11x128xbf16>
    %c0_9 = arith.constant 0 : index
    %c896 = arith.constant 896 : index
    %64 = vector.load %arg4[%c0_9, %c896] : memref<11x1024xbf16, #tpu.memory_space<vmem>>, vector<11x128xbf16>
    tpu.vector_store %arg4[%c0_9, %c896], %63 {strides = array<i32>} : memref<11x1024xbf16, #tpu.memory_space<vmem>>, vector<11x128xbf16>,
    %c0_10 = arith.constant 0 : index
    %c0_11 = arith.constant 0 : index
    %65 = vector.load %arg4[%c0_10, %c0_11] : memref<11x1024xbf16, #tpu.memory_space<vmem>>, vector<11x1024xbf16>
    %c0_12 = arith.constant 0 : index
    %c0_13 = arith.constant 0 : index
    %66 = vector.load %arg2[%c0_12, %c0_13] : memref<1024x128xbf16, #tpu.memory_space<vmem>>, vector<1024x128xbf16>
    %cst = arith.constant dense<0.000000e+00> : vector<11x128xf32>
    %67 = tpu.matmul %65, %66, %cst {dimension_numbers = #tpu.dot_dimension_numbers<[1], [0], [0], [1], [0, 0, 1, 1], [], []>} : vector<11x1024xbf16>, vector<1024x128xbf16>, vector<11x128xf32> -> vector<11x128xf32>
    %c0_14 = arith.constant 0 : index
    %c0_15 = arith.constant 0 : index
    %68 = vector.load %arg3[%c0_14, %c0_15] : memref<11x128xf32, #tpu.memory_space<vmem>>, vector<11x128xf32>
    tpu.vector_store %arg3[%c0_14, %c0_15], %67 {strides = array<i32>} : memref<11x128xf32, #tpu.memory_space<vmem>>, vector<11x128xf32>,
    return
  }
  func.func @transform_0(%arg0: i32) -> (i32, i32) {
    %c0_i32 = arith.constant 0 : i32
    %c0_i32_0 = arith.constant 0 : i32
    return %arg0, %c0_i32 : i32, i32
  }
  func.func @transform_1(%arg0: i32) -> (i32, i32) {
    %c0_i32 = arith.constant 0 : i32
    %c0_i32_0 = arith.constant 0 : i32
    %c0_i32_1 = arith.constant 0 : i32
    return %c0_i32, %c0_i32_0 : i32, i32
  }
  func.func @transform_2(%arg0: i32) -> (i32, i32) {
    %c0_i32 = arith.constant 0 : i32
    %c0_i32_0 = arith.constant 0 : i32
    return %arg0, %c0_i32 : i32, i32
  }
}

</mosaic_0001>

<bundles_post_ra>
// kernel: _lambda_.1
= control target key start
LH: loop header
LB: loop body
LE: loop exit
PB: predicated region body
PF: predicated region fallthrough
CT: control target
= control target key end

     0   :  { %7 = vsyncpa [#allocation4], 0  ;;  %s1279_s9 = smov [#allocation3]   ;;  %s1404_s0 = inlined_call_operand.vmem [shape: s32[11,8], index: 0, kind: input, shape index: {}]   ;;  %s1405_s1 = inlined_call_operand.hbm [shape: bf16[1024,128], index: 1, kind: input, shape index: {}]   ;;  %s1406_s2 = inlined_call_operand.vmem [shape: f32[11,128], index: 2, kind: output, shape index: {}]  }
   0x1   :  { %s15_s10 = sshll.u32 %s1279_s9, 4  ;;  %s1255_s13 = scalar_lea.hbm %s1405_s1, 8192  ;;  %s16_s10 = int_to_ptr.vmem [resolvable:$true] %s15_s10 }
   0x2   :  { %p1256_p0 = scmp.ne.s32.totalorder %s1405_s1, %s1255_s13  ;;  %p1259_p1 = scmp.lt.u32.totalorder %s1255_s13, %s1405_s1 }
   0x4   :  { %p1261_p2 = pnand %p1259_p1, %p1256_p0 }
   0x6   :  { %1264 = shalt.err (!%p1261_p2)
}
   0x7   :  { %s1265_s18 = scalar_lea.vmem %s16_s10, 8192  ;;  %p1270_p4 = scmp.lt.s32.totalorder %s16_s10, %s16_s10 }
   0x8   :  { %p1266_p3 = scmp.ne.s32.totalorder %s16_s10, %s1265_s18  ;;  %p1271_p5 = scmp.lt.s32.totalorder %s1265_s18, %s1265_s18 }
   0xa   :  { %p1272_p6 = por %p1271_p5, %p1270_p4 }
   0xc   :  { %p1273_p7 = pnand %p1272_p6, %p1266_p3 }
   0xe   :  { %1276 = shalt.err (!%p1273_p7)
}
   0xf   :  { %s1280_s19 = smov 64   ;;  %s1281_s20 = smov 4  }
  0x10   :  { %21 = dma.hbm_to_vmem [thread:$0]  %s1405_s1, 8192, %s16_s10, [#allocation4], %s1280_s19, %s1280_s19, %s1281_s20  }
  0x11   :  { %1277 = dma.done.wait [#allocation4], 8192  }
  0x12   :  { %1278 = vsyncadd [#allocation4], 4294959104  ;;  %v1282_v0 = vmov 0   ;;  %v1321_v1 = vld [vmem:[%s1404_s0 + $0x8] sm:$0x7]  ;;  %v1326_v2 = vld [vmem:[%s1404_s0] sm:$0xff]  ;;  %v28_v44 = vlaneseq }
  0x13   :  { %1178 = vset.pattern.permute.xlu1 %v1282_v0  ;;  %1176 = vset.pattern.permute.xlu0 %v1282_v0  ;;  %v1191_v3 = vld [vmem:[#allocation3 + $0x40] sm:$0xff]   ;;  %v1193_v5 = vld [vmem:[#allocation3 + $0x48] sm:$0xff]   ;;  %v1283_v7 = vmov 1   ;;  %v1195_v8 = vld [vmem:[#allocation3 + $0x50] sm:$0xff]   ;;  %v1284_v11 = vmov 3   ;;  %v1285_v12 = vmov 2  }
  0x14   :  { %34 = vperm.xlu0 %1176, %v1321_v1   ;;  %31 = vperm.xlu1 %1178, %v1326_v2   ;;  %v1192_v4 = vld [vmem:[#allocation3] sm:$0xff]   ;;  %v1194_v6 = vld [vmem:[#allocation3 + $0x8] sm:$0xff]   ;;  %v1196_v9 = vld [vmem:[#allocation3 + $0x10] sm:$0xff]   ;;  %v1286_v18 = vmov 4   ;;  %v1287_v23 = vmov 5   ;;  %v1288_v29 = vmov 6  }
  0x15   :  { %1076 = vmatprep.subr.bf16.mxu0 %v1191_v3  ;;  %v1197_v10 = vld [vmem:[#allocation3 + $0x58] sm:$0xff]   ;;  %v1199_v13 = vld [vmem:[#allocation3 + $0xc0] sm:$0xff]   ;;  %v1203_v17 = vld [vmem:[#allocation3 + $0xc8] sm:$0xff]   ;;  %v1289_v37 = vmov 7   ;;  %v1344_v45 = vand.u32 127, %v28_v44  ;;  %vm51_vm0 = vcmask 1041408  }
  0x16   :  { %1077 = vmatpush3.bf16.msra.mxu0 %v1192_v4  ;;  %v1200_v14 = vld [vmem:[#allocation3 + $0x80] sm:$0xff]   ;;  %v1198_v15 = vld [vmem:[#allocation3 + $0x18] sm:$0xff]   ;;  %1098 = vmatprep.subr.bf16.mxu1 %v1199_v13  ;;  %v1204_v19 = vld [vmem:[#allocation3 + $0x88] sm:$0xff]   ;;  %vm52_vm1 = vsmask.f32 1280  ;;  %v1290_v48 = vmov 0.0  }
  0x17   :  { %1078 = vmatprep.subr.bf16.mxu0 %v1193_v5  ;;  %1099 = vmatpush3.bf16.msra.mxu1 %v1200_v14  ;;  %v1201_v16 = vld [vmem:[#allocation3 + $0x60] sm:$0xff]   ;;  %v1205_v21 = vld [vmem:[#allocation3 + $0x68] sm:$0xff]   ;;  %v1207_v22 = vld [vmem:[#allocation3 + $0xd0] sm:$0xff]  }
  0x18   :  { %1177 = vset.pattern.permute.xlu0 %v1283_v7  ;;  %1179 = vset.pattern.permute.xlu1 %v1283_v7  ;;  %v1202_v20 = vld [vmem:[#allocation3 + $0x20] sm:$0xff]   ;;  %v1208_v24 = vld [vmem:[#allocation3 + $0x90] sm:$0xff]   ;;  %v1206_v25 = vld [vmem:[#allocation3 + $0x28] sm:$0xff]  }
  0x19   :  { %61 = vperm.xlu0 %1177, %v1321_v1   ;;  %58 = vperm.xlu1 %1179, %v1326_v2   ;;  %v1209_v26 = vld [vmem:[#allocation3 + $0x70] sm:$0xff]   ;;  %v1211_v27 = vld [vmem:[#allocation3 + $0xd8] sm:$0xff]   ;;  %v1215_v32 = vld [vmem:[#allocation3 + $0xe0] sm:$0xff]  }
  0x1a   :  { %1079 = vmatpush3.bf16.msra.mxu0 %v1194_v6  ;;  %1100 = vmatprep.subr.bf16.mxu1 %v1203_v17  ;;  %v1212_v28 = vld [vmem:[#allocation3 + $0x98] sm:$0xff]   ;;  %v1210_v30 = vld [vmem:[#allocation3 + $0x30] sm:$0xff]   ;;  %v1216_v33 = vld [vmem:[#allocation3 + $0xa0] sm:$0xff]  }
  0x1b   :  { %1080 = vmatprep.subr.bf16.mxu0 %v1195_v8  ;;  %1101 = vmatpush3.bf16.msra.mxu1 %v1204_v19  ;;  %v1213_v31 = vld [vmem:[#allocation3 + $0x78] sm:$0xff]   ;;  %v1218_v35 = vld [vmem:[#allocation3 + $0xe8] sm:$0xff]   ;;  %v1217_v36 = vld [vmem:[#allocation3 + $0x140] sm:$0xff]  }
  0x1c   :  { %1102 = vmatprep.subr.bf16.mxu1 %v1207_v22  ;;  %v1214_v34 = vld [vmem:[#allocation3 + $0x38] sm:$0xff]   ;;  %v1220_v38 = vld [vmem:[#allocation3 + $0xa8] sm:$0xff]   ;;  %v1222_v39 = vld [vmem:[#allocation3 + $0xf0] sm:$0xff]  }
  0x1d   :  { %1181 = vset.pattern.permute.xlu0 %v1284_v11  ;;  %1180 = vset.pattern.permute.xlu1 %v1285_v12  ;;  %v1224_v40 = vld [vmem:[#allocation3 + $0xb0] sm:$0xff]   ;;  %v1226_v41 = vld [vmem:[#allocation3 + $0xf8] sm:$0xff]   ;;  %v1231_v43 = vld [vmem:[#allocation3 + $0x1c0] sm:$0xff]  }
  0x1e   :  { %109 = vperm.xlu0 %1181, %v1321_v1   ;;  %85 = vperm.xlu1 %1180, %v1321_v1   ;;  %v1228_v42 = vld [vmem:[#allocation3 + $0xb8] sm:$0xff]   ;;  %vm1349_vm4 = vmand %vm51_vm0, %vm52_vm1  ;;  %v54_v51 = vld [vmem:[#allocation2 + $0x20] sm:$0x3] }
  0x1f   :  { %1081 = vmatpush3.bf16.msra.mxu0 %v1196_v9  ;;  %1103 = vmatpush3.bf16.msra.mxu1 %v1208_v24  ;;  %v78_v58 = vld [vmem:[#allocation2 + $0x24] sm:$0x3]  ;;  %v102_v4 = vld [vmem:[#allocation2 + $0x28] sm:$0x3] }
  0x20   :  { %1082 = vmatprep.subr.bf16.mxu0 %v1197_v10  ;;  %1104 = vmatprep.subr.bf16.mxu1 %v1211_v27  ;;  %v1219_v22 = vld [vmem:[#allocation3 + $0x100] sm:$0xff]  }
  0x21   :  { %v1248_v50 = vld [vmem:[#allocation3 + $0x1a0] sm:$0xff]  }
  0x22   :  { %82 = vperm.xlu1 %1180, %v1326_v2   ;;  %1183 = vset.pattern.permute.xlu0 %v1286_v18 }
  0x23   :  { %133 = vperm.xlu0 %1183, %v1321_v1   ;;  %1083 = vmatpush3.bf16.msra.mxu0 %v1198_v15  ;;  %v150_v15 = vld [vmem:[#allocation2 + $0x30] sm:$0x3] }
  0x24   :  { %1084 = vmatprep.subr.bf16.mxu0 %v1201_v16  ;;  %1105 = vmatpush3.bf16.msra.mxu1 %v1212_v28 }
  0x25   :  { %1106 = vmatprep.subr.bf16.mxu1 %v1215_v32  ;;  %v1225_v32 = vld [vmem:[#allocation3 + $0x150] sm:$0xff]  }
  0x26   :  { %1182 = vset.pattern.permute.xlu1 %v1284_v11 }
  0x27   :  { %106 = vperm.xlu1 %1182, %v1326_v2   ;;  %1186 = vset.pattern.permute.xlu0 %v1287_v23 }
  0x28   :  { %154 = vperm.xlu0 %1186, %v1326_v2   ;;  %1085 = vmatpush3.bf16.msra.mxu0 %v1202_v20 }
  0x29   :  { %1086 = vmatprep.subr.bf16.mxu0 %v1205_v21  ;;  %1107 = vmatpush3.bf16.msra.mxu1 %v1216_v33 }
  0x2a   :  { %1108 = vmatprep.subr.bf16.mxu1 %v1218_v35 }
  0x2b   :  { %1184 = vset.pattern.permute.xlu1 %v1287_v23  ;;  %v1221_v23 = vld [vmem:[#allocation3 + $0x148] sm:$0xff]  }
  0x2c   :  { %157 = vperm.xlu1 %1184, %v1321_v1   ;;  %1189 = vset.pattern.permute.xlu0 %v1288_v29 }
  0x2d   :  { %178 = vperm.xlu0 %1189, %v1326_v2   ;;  %1087 = vmatpush3.bf16.msra.mxu0 %v1206_v25 }
  0x2e   :  { %1088 = vmatprep.subr.bf16.mxu0 %v1209_v26  ;;  %1109 = vmatpush3.bf16.msra.mxu1 %v1220_v38 }
  0x2f   :  { %1110 = vmatprep.subr.bf16.mxu1 %v1222_v39  ;;  %v1229_v39 = vld [vmem:[#allocation3 + $0x158] sm:$0xff]  }
  0x30   :  { %1185 = vset.pattern.permute.xlu1 %v1286_v18 }
  0x31   :  { %130 = vperm.xlu1 %1185, %v1326_v2   ;;  %1089 = vmatpush3.bf16.msra.mxu0 %v1210_v30 }
  0x32   :  { %1090 = vmatprep.subr.bf16.mxu0 %v1213_v31  ;;  %1190 = vset.pattern.permute.xlu0 %v1289_v37 }
  0x33   :  { %1111 = vmatpush3.bf16.msra.mxu1 %v1224_v40 }
  0x34   :  { %1112 = vmatprep.subr.bf16.mxu1 %v1226_v41 }
  0x35   :  { %1187 = vset.pattern.permute.xlu1 %v1288_v29  ;;  %1091 = vmatpush3.bf16.msra.mxu0 %v1214_v34  ;;  %v1223_v29 = vld [vmem:[#allocation3 + $0x108] sm:$0xff]   ;;  %v174_v34 = vld [vmem:[#allocation2 + $0x34] sm:$0x3] }
  0x36   :  { %181 = vperm.xlu1 %1187, %v1321_v1   ;;  %1120 = vmatprep.subr.bf16.mxu0 %v1217_v36 }
  0x37   :  { %1113 = vmatpush3.bf16.msra.mxu1 %v1228_v42 }
  0x38   :  { %1142 = vmatprep.subr.bf16.mxu1 %v1231_v43 }
  0x3a   :  { %1188 = vset.pattern.permute.xlu1 %v1289_v37  ;;  %v1227_v37 = vld [vmem:[#allocation3 + $0x110] sm:$0xff]  }
  0x3b   :  { %205 = vperm.xlu1 %1188, %v1321_v1  }
  0x3f   :  { %202 = vperm.xlu1 %1188, %v1326_v2   ;;  %v126_v2 = vld [vmem:[#allocation2 + $0x2c] sm:$0x3] }
  0x93   :  { %v32_v46 = vpop.permute.xlu1 %31  ;;  %v35_v47 = vpop.permute.xlu0 %34 }
  0x94   :  { %vm36_vm2 = vcmp.eq.s32.totalorder %v1344_v45, %v32_v46  ;;  %vm37_vm3 = vcmp.eq.s32.totalorder %v1344_v45, %v35_v47  ;;  %v1230_v47 = vld [vmem:[#allocation3 + $0x118] sm:$0xff]  }
  0x95   :  { %v956_v49 = vsel %vm36_vm2, 1.0, %v1290_v48  ;;  %v957_v52 = vsel %vm37_vm3, 1.0, %v1290_v48 }
  0x96   :  { %v1060_v53 = vpack.c.bf16 %v956_v49, %v956_v49  ;;  %v1061_v54 = vpack.c.bf16 %v957_v52, %v957_v52 }
  0x98   :  { %50 = vst [vmem:[#allocation2] sm:$0xf] %v1060_v53  ;;  %v55_v55 = vsel %vm1349_vm4, %v1061_v54, %v54_v51  ;;  %v62_v56 = vpop.permute.xlu0 %61  ;;  %v59_v57 = vpop.permute.xlu1 %58  ;;  %v1232_v53 = vld [vmem:[#allocation3 + $0x180] sm:$0xff]  }
  0x99   :  { %56 = vst [vmem:[#allocation2 + $0x20] sm:$0x3] %v55_v55  ;;  %vm64_vm5 = vcmp.eq.s32.totalorder %v1344_v45, %v62_v56  ;;  %vm63_vm6 = vcmp.eq.s32.totalorder %v1344_v45, %v59_v57  ;;  %v1233_v54 = vld [vmem:[#allocation3 + $0x160] sm:$0xff]   ;;  %v1235_v55 = vld [vmem:[#allocation3 + $0x1c8] sm:$0xff]  }
  0x9a   :  { %v961_v59 = vsel %vm64_vm5, 1.0, %v1290_v48  ;;  %v960_v60 = vsel %vm63_vm6, 1.0, %v1290_v48  ;;  %v1234_v57 = vld [vmem:[#allocation3 + $0x120] sm:$0xff]  }
  0x9b   :  { %v1063_v61 = vpack.c.bf16 %v961_v59, %v961_v59  ;;  %v1062_v62 = vpack.c.bf16 %v960_v60, %v960_v60  ;;  %v1236_v60 = vld [vmem:[#allocation3 + $0x188] sm:$0xff]  }
  0x9d   :  { %v79_v63 = vsel %vm1349_vm4, %v1063_v61, %v78_v58  ;;  %77 = vst [vmem:[#allocation2 + $0x4] sm:$0xf] %v1062_v62  ;;  %v110_v0 = vpop.permute.xlu0 %109  ;;  %v86_v1 = vpop.permute.xlu1 %85  ;;  %v198_v58 = vld [vmem:[#allocation2 + $0x38] sm:$0x3]  ;;  %v1237_v61 = vld [vmem:[#allocation3 + $0x168] sm:$0xff]  }
  0x9e   :  { %80 = vst [vmem:[#allocation2 + $0x24] sm:$0x3] %v79_v63  ;;  %vm112_vm7 = vcmp.eq.s32.totalorder %v1344_v45, %v110_v0  ;;  %vm88_vm8 = vcmp.eq.s32.totalorder %v1344_v45, %v86_v1  ;;  %v1239_v63 = vld [vmem:[#allocation3 + $0x1d0] sm:$0xff]  }
  0x9f   :  { %v969_v3 = vsel %vm112_vm7, 1.0, %v1290_v48  ;;  %v965_v5 = vsel %vm88_vm8, 1.0, %v1290_v48 }
  0xa0   :  { %v1067_v6 = vpack.c.bf16 %v969_v3, %v969_v3  ;;  %v1065_v7 = vpack.c.bf16 %v965_v5, %v965_v5  ;;  %v1241_v5 = vld [vmem:[#allocation3 + $0x170] sm:$0xff]  }
  0xa1   :  { %v83_v8 = vpop.permute.xlu1 %82 }
  0xa2   :  { %v127_v9 = vsel %vm1349_vm4, %v1067_v6, %v126_v2  ;;  %v103_v10 = vsel %vm1349_vm4, %v1065_v7, %v102_v4  ;;  %vm87_vm9 = vcmp.eq.s32.totalorder %v1344_v45, %v83_v8  ;;  %v134_v11 = vpop.permute.xlu0 %133  ;;  %v1238_v2 = vld [vmem:[#allocation3 + $0x128] sm:$0xff]   ;;  %v1240_v4 = vld [vmem:[#allocation3 + $0x190] sm:$0xff]   ;;  %v222_v6 = vld [vmem:[#allocation2 + $0x3c] sm:$0x3] }
  0xa3   :  { %128 = vst [vmem:[#allocation2 + $0x2c] sm:$0x3] %v127_v9  ;;  %104 = vst [vmem:[#allocation2 + $0x28] sm:$0x3] %v103_v10  ;;  %v964_v12 = vsel %vm87_vm9, 1.0, %v1290_v48  ;;  %vm136_vm10 = vcmp.eq.s32.totalorder %v1344_v45, %v134_v11  ;;  %v1243_v8 = vld [vmem:[#allocation3 + $0x1d8] sm:$0xff]  }
  0xa4   :  { %v1064_v13 = vpack.c.bf16 %v964_v12, %v964_v12  ;;  %v225_v14 = vld [vmem:[#allocation2] sm:$0xff]  ;;  %v973_v16 = vsel %vm136_vm10, 1.0, %v1290_v48 }
  0xa5   :  { %v229_v17 = vld [vmem:[#allocation2 + $0x20] sm:$0x33]  ;;  %v1069_v18 = vpack.c.bf16 %v973_v16, %v973_v16  ;;  %v1245_v16 = vld [vmem:[#allocation3 + $0x178] sm:$0xff]  }
  0xa6   :  { %101 = vst [vmem:[#allocation2 + $0x8] sm:$0xf] %v1064_v13  ;;  %v107_v19 = vpop.permute.xlu1 %106  ;;  %v988_v20 = vcombine.low %v225_v14, %v229_v17  ;;  %v989_v21 = vcombine.high %v225_v14, %v229_v17  ;;  %v1242_v13 = vld [vmem:[#allocation3 + $0x130] sm:$0xff]  }
  0xa7   :  { %vm111_vm11 = vcmp.eq.s32.totalorder %v1344_v45, %v107_v19  ;;  %v151_v24 = vsel %vm1349_vm4, %v1069_v18, %v150_v15  ;;  %v155_v25 = vpop.permute.xlu0 %154  ;;  %v1244_v15 = vld [vmem:[#allocation3 + $0x198] sm:$0xff]   ;;  %v1247_v18 = vld [vmem:[#allocation3 + $0x1e0] sm:$0xff]  }
  0xa8   :  { %v968_v26 = vsel %vm111_vm11, 1.0, %v1290_v48  ;;  %817 = vmatprep.mubr.bf16.mxu0 %v989_v21  ;;  %152 = vst [vmem:[#allocation2 + $0x30] sm:$0x3] %v151_v24  ;;  %vm159_vm12 = vcmp.eq.s32.totalorder %v1344_v45, %v155_v25  ;;  %v1249_v21 = vld [vmem:[#allocation3 + $0x1e8] sm:$0xff]  }
  0xa9   :  { %v1066_v27 = vpack.c.bf16 %v968_v26, %v968_v26  ;;  %818 = vmatmul.mubr.bf16.vlgmr.msra.gmra.mrb[0].mxu0 %v988_v20  ;;  %v976_v28 = vsel %vm159_vm12, 1.0, %v1290_v48  ;;  %v1246_v20 = vld [vmem:[#allocation3 + $0x138] sm:$0xff]   ;;  %v1252_v26 = vld [vmem:[#allocation3 + $0x1b0] sm:$0xff]  }
  0xaa   :  { %1121 = vmatpush3.bf16.msra.mxu0 %v1219_v22  ;;  %v1070_v30 = vpack.c.bf16 %v976_v28, %v976_v28  ;;  %v230_v46 = vld [vmem:[#allocation2 + $0x28] sm:$0x33]  ;;  %v1254_v28 = vld [vmem:[#allocation3 + $0x1b8] sm:$0xff]  }
  0xab   :  { %125 = vst [vmem:[#allocation2 + $0xc] sm:$0xf] %v1066_v27  ;;  %1122 = vmatprep.subr.bf16.mxu0 %v1221_v23  ;;  %v158_v31 = vpop.permute.xlu1 %157  ;;  %v1250_v22 = vld [vmem:[#allocation3 + $0x1a8] sm:$0xff]   ;;  %v1251_v23 = vld [vmem:[#allocation3 + $0x1f0] sm:$0xff]   ;;  %v1253_v27 = vld [vmem:[#allocation3 + $0x1f8] sm:$0xff]  }
  0xac   :  { %vm160_vm13 = vcmp.eq.s32.totalorder %v1344_v45, %v158_v31  ;;  %173 = vst [vmem:[#allocation2 + $0x14] sm:$0xf] %v1070_v30  ;;  %v179_v33 = vpop.permute.xlu0 %178 }
  0xad   :  { %v977_v35 = vsel %vm160_vm13, 1.0, %v1290_v48  ;;  %vm183_vm14 = vcmp.eq.s32.totalorder %v1344_v45, %v179_v33 }
  0xae   :  { %1123 = vmatpush3.bf16.msra.mxu0 %v1223_v29  ;;  %v1071_v36 = vpack.c.bf16 %v977_v35, %v977_v35  ;;  %v980_v38 = vsel %vm183_vm14, 1.0, %v1290_v48 }
  0xaf   :  { %1124 = vmatprep.subr.bf16.mxu0 %v1225_v32  ;;  %v1072_v40 = vpack.c.bf16 %v980_v38, %v980_v38 }
  0xb0   :  { %v175_v41 = vsel %vm1349_vm4, %v1071_v36, %v174_v34  ;;  %v131_v42 = vpop.permute.xlu1 %130 }
  0xb1   :  { %176 = vst [vmem:[#allocation2 + $0x34] sm:$0x3] %v175_v41  ;;  %vm135_vm15 = vcmp.eq.s32.totalorder %v1344_v45, %v131_v42  ;;  %197 = vst [vmem:[#allocation2 + $0x18] sm:$0xf] %v1072_v40 }
  0xb2   :  { %1125 = vmatpush3.bf16.msra.mxu0 %v1227_v37  ;;  %v972_v43 = vsel %vm135_vm15, 1.0, %v1290_v48  ;;  %v226_v44 = vld [vmem:[#allocation2 + $0x8] sm:$0xff] }
  0xb3   :  { %v1068_v49 = vpack.c.bf16 %v972_v43, %v972_v43  ;;  %1126 = vmatprep.subr.bf16.mxu0 %v1229_v39  ;;  %v990_v51 = vcombine.low %v226_v44, %v230_v46  ;;  %v991_v52 = vcombine.high %v226_v44, %v230_v46 }
  0xb5   :  { %149 = vst [vmem:[#allocation2 + $0x10] sm:$0xf] %v1068_v49  ;;  %858 = vmatprep.mubr.bf16.mxu1 %v991_v52  ;;  %v182_v56 = vpop.permute.xlu1 %181 }
  0xb6   :  { %1127 = vmatpush3.bf16.msra.mxu0 %v1230_v47  ;;  %859 = vmatmul.mubr.bf16.vlgmr.msra.gmra.mrb[0].mxu1 %v990_v51  ;;  %vm184_vm0 = vcmp.eq.s32.totalorder %v1344_v45, %v182_v56 }
  0xb7   :  { %1143 = vmatpush3.bf16.msra.mxu1 %v1232_v53  ;;  %v981_v59 = vsel %vm184_vm0, 1.0, %v1290_v48  ;;  %1128 = vmatprep.subr.bf16.mxu0 %v1233_v54 }
  0xb8   :  { %v1073_v62 = vpack.c.bf16 %v981_v59, %v981_v59  ;;  %1144 = vmatprep.subr.bf16.mxu1 %v1235_v55  ;;  %v231_v3 = vld [vmem:[#allocation2 + $0x30] sm:$0x33] }
  0xba   :  { %v199_v0 = vsel %vm1349_vm4, %v1073_v62, %v198_v58  ;;  %1129 = vmatpush3.bf16.msra.mxu0 %v1234_v57  ;;  %v206_v1 = vpop.permute.xlu1 %205 }
  0xbb   :  { %200 = vst [vmem:[#allocation2 + $0x38] sm:$0x3] %v199_v0  ;;  %1145 = vmatpush3.bf16.msra.mxu1 %v1236_v60  ;;  %vm208_vm1 = vcmp.eq.s32.totalorder %v1344_v45, %v206_v1  ;;  %1130 = vmatprep.subr.bf16.mxu0 %v1237_v61 }
  0xbc   :  { %v985_v7 = vsel %vm208_vm1, 1.0, %v1290_v48  ;;  %1146 = vmatprep.subr.bf16.mxu1 %v1239_v63  ;;  %v227_v9 = vld [vmem:[#allocation2 + $0x10] sm:$0xff] }
  0xbd   :  { %v1075_v10 = vpack.c.bf16 %v985_v7, %v985_v7  ;;  %v993_v11 = vcombine.high %v227_v9, %v231_v3 }
  0xbe   :  { %1131 = vmatpush3.bf16.msra.mxu0 %v1238_v2  ;;  %v203_v12 = vpop.permute.xlu1 %202 }
  0xbf   :  { %v223_v14 = vsel %vm1349_vm4, %v1075_v10, %v222_v6  ;;  %1147 = vmatpush3.bf16.msra.mxu1 %v1240_v4  ;;  %vm207_vm2 = vcmp.eq.s32.totalorder %v1344_v45, %v203_v12  ;;  %1132 = vmatprep.subr.bf16.mxu0 %v1241_v5  ;;  %v992_v45 = vcombine.low %v227_v9, %v231_v3 }
  0xc0   :  { %224 = vst [vmem:[#allocation2 + $0x3c] sm:$0x3] %v223_v14  ;;  %v984_v17 = vsel %vm207_vm2, 1.0, %v1290_v48  ;;  %1148 = vmatprep.subr.bf16.mxu1 %v1243_v8  ;;  %899 = vmatprep.mubr.bf16.mxu0 %v993_v11 }
  0xc1   :  { %v1074_v19 = vpack.c.bf16 %v984_v17, %v984_v17 }
  0xc2   :  { %1133 = vmatpush3.bf16.msra.mxu0 %v1242_v13 }
  0xc3   :  { %221 = vst [vmem:[#allocation2 + $0x1c] sm:$0xf] %v1074_v19  ;;  %1149 = vmatpush3.bf16.msra.mxu1 %v1244_v15  ;;  %1134 = vmatprep.subr.bf16.mxu0 %v1245_v16 }
  0xc4   :  { %1150 = vmatprep.subr.bf16.mxu1 %v1247_v18 }
  0xc6   :  { %1135 = vmatpush3.bf16.msra.mxu0 %v1246_v20 }
  0xc7   :  { %1151 = vmatpush3.bf16.msra.mxu1 %v1248_v50  ;;  %v232_v24 = vld [vmem:[#allocation2 + $0x38] sm:$0x33] }
  0xc8   :  { %1152 = vmatprep.subr.bf16.mxu1 %v1249_v21 }
  0xc9   :  { %900 = vmatmul.mubr.bf16.vlgmr.msra.gmra.mrb[4].mxu0 %v992_v45 }
  0xca   :  { %v228_v48 = vld [vmem:[#allocation2 + $0x18] sm:$0xff] }
  0xcb   :  { %1153 = vmatpush3.bf16.msra.mxu1 %v1250_v22  ;;  %v995_v25 = vcombine.high %v228_v48, %v232_v24  ;;  %v994_v29 = vcombine.low %v228_v48, %v232_v24 }
  0xcc   :  { %1154 = vmatprep.subr.bf16.mxu1 %v1251_v23 }
  0xcd   :  { %940 = vmatprep.mubr.bf16.mxu1 %v995_v25 }
  0xcf   :  { %1155 = vmatpush3.bf16.msra.mxu1 %v1252_v26 }
  0xd0   :  { %1156 = vmatprep.subr.bf16.mxu1 %v1253_v27 }
  0xd3   :  { %1157 = vmatpush3.bf16.msra.mxu1 %v1254_v28 }
  0xd6   :  { %941 = vmatmul.mubr.bf16.vlgmr.msra.gmra.mrb[4].mxu1 %v994_v29 }
 0x17c   :  { %v1092_v30 = vpop.f32.mrb[0].mxu0 }
 0x17d   :  { %v1093_v31 = vpop.f32.mrb[1].mxu0 }
 0x17e   :  { %v1094_v32 = vadd.f32 %v1093_v31, %v1092_v30  ;;  %v1095_v33 = vpop.f32.mrb[2].mxu0 }
 0x17f   :  { %v1096_v34 = vpop.f32.mrb[3].mxu0 }
 0x180   :  { %v1097_v35 = vadd.f32 %v1096_v34, %v1095_v33 }
 0x189   :  { %v1114_v36 = vpop.f32.mrb[0].mxu1 }
 0x18a   :  { %v1115_v37 = vpop.f32.mrb[1].mxu1 }
 0x18b   :  { %v1116_v38 = vadd.f32 %v1115_v37, %v1114_v36  ;;  %v1117_v39 = vpop.f32.mrb[2].mxu1 }
 0x18c   :  { %v1118_v40 = vpop.f32.mrb[3].mxu1 }
 0x18d   :  { %v861_v41 = vadd.f32 %v1116_v38, %v1094_v32  ;;  %v1119_v42 = vadd.f32 %v1118_v40, %v1117_v39 }
 0x18f   :  { %v864_v43 = vadd.f32 %v1119_v42, %v1097_v35 }
 0x19c   :  { %v1136_v44 = vpop.f32.mrb[4].mxu0 }
 0x19d   :  { %v1137_v46 = vpop.f32.mrb[5].mxu0 }
 0x19e   :  { %v1138_v47 = vadd.f32 %v1137_v46, %v1136_v44  ;;  %v1139_v49 = vpop.f32.mrb[6].mxu0 }
 0x19f   :  { %v1140_v51 = vpop.f32.mrb[7].mxu0 }
 0x1a0   :  { %v902_v52 = vadd.f32 %v1138_v47, %v861_v41  ;;  %v1141_v53 = vadd.f32 %v1140_v51, %v1139_v49 }
 0x1a2   :  { %v905_v54 = vadd.f32 %v1141_v53, %v864_v43 }
 0x1a9   :  { %v1158_v55 = vpop.f32.mrb[4].mxu1 }
 0x1aa   :  { %v1159_v56 = vpop.f32.mrb[5].mxu1 }
 0x1ab   :  { %v1160_v57 = vadd.f32 %v1159_v56, %v1158_v55  ;;  %v1161_v58 = vpop.f32.mrb[6].mxu1 }
 0x1ac   :  { %v1162_v59 = vpop.f32.mrb[7].mxu1 }
 0x1ad   :  { %v943_v60 = vadd.f32 %v1160_v57, %v902_v52  ;;  %v1163_v61 = vadd.f32 %v1162_v59, %v1161_v58 }
 0x1af   :  { %949 = vst [vmem:[%s1406_s2] sm:$0xff] %v943_v60  ;;  %v946_v62 = vadd.f32 %v1163_v61, %v905_v54 }
 0x1b1   :  { %950 = vst [vmem:[%s1406_s2 + $0x8] sm:$0x7] %v946_v62 }
 0x1b2   :  { %955 = vsyncpa [#allocation4], 1 }

</bundles_post_ra>
